<compile_context>
chip_gen: v7x
topology: tpu7x:2x2x1
jax: 0.10.0
libtpu: 0.0.40
codegen_flags: <defaults>
</compile_context>

<pallas_src>
import functools
import math

import jax
import jax.numpy as jnp
from jax.experimental import pallas as pl
from jax.experimental.pallas import tpu as pltpu

_MiB = 1024 * 1024


# ----------------------------------------------------------------------------
# Buffer setup (mirrors PositionalEncoding.__init__); cast ONCE at init time.
# ----------------------------------------------------------------------------
def build_pe_table(d_model: int, max_len: int = 5000,
                   dtype=jnp.float32) -> jnp.ndarray:
    """Returns the `pe` buffer with shape (max_len, 1, d_model) in `dtype`."""
    assert d_model % 2 == 0, "d_model must be even (sin/cos interleave)"
    position = jnp.arange(0, max_len, dtype=jnp.float32)[:, None]          # (L, 1)
    div_term = jnp.exp(
        jnp.arange(0, d_model, 2, dtype=jnp.float32)
        * (-math.log(10000.0) / d_model)
    )                                                                        # (D/2,)
    ang = position * div_term                                                # (L, D/2)
    # interleave: even columns = sin, odd columns = cos
    pe = jnp.stack([jnp.sin(ang), jnp.cos(ang)], axis=-1).reshape(max_len, d_model)
    return pe[:, None, :].astype(dtype)                                      # (L, 1, D)


# ----------------------------------------------------------------------------
# Pallas kernel: out = dropout(x + pe_block)    (one seq tile per grid step)
# ----------------------------------------------------------------------------
def _pe_kernel(seed_ref, x_ref, pe_ref, o_ref, *, p: float, train: bool):
    # x_ref : (TS, B, D) VMEM   pe_ref : (TS, 1, D) VMEM   seed_ref : (1,) SMEM
    y = x_ref[...] + pe_ref[...]                 # broadcast over the batch axis
    if train and p > 0.0:
        if p >= 1.0:
            y = jnp.zeros_like(y)                # nn.Dropout(p=1.0) zeroes all
        else:
            # Inverted dropout via the on-chip PRNG.  Seed with (user seed,
            # tile id) as two separate words so tiles/calls never collide.
            # NOTE: the mask for a given element depends on block_rows (bits
            # are drawn per tile), so it is not bitwise-reproducible across
            # different tilings -- same caveat as any tiled dropout.
            pltpu.prng_seed(seed_ref[0], pl.program_id(0))
            bits = pltpu.bitcast(pltpu.prng_random_bits(y.shape), jnp.uint32)
            threshold = jnp.uint32(min(int(p * float(2 ** 32)), 2 ** 32 - 1))
            keep = bits >= threshold             # P(keep) = 1 - p
            scale = 1.0 / (1.0 - p)
            y = jnp.where(keep, y * scale, jnp.zeros_like(y))
    o_ref[...] = y


# ----------------------------------------------------------------------------
# Wrapper: generation-aware tiling + auto-pipelined pallas_call
# ----------------------------------------------------------------------------
def _tpu_generation() -> int:
    """Best-effort TPU generation detection (0 = unknown)."""
    try:
        kind = jax.devices()[0].device_kind.lower()
    except Exception:  # pragma: no cover - defensive
        return 0
    if "v7" in kind or "7x" in kind:
        return 7
    if "v6" in kind:
        return 6
    if "v5" in kind:
        return 5
    if "v4" in kind:
        return 4
    return 0


def _sublane_pack(itemsize: int) -> int:
    # 32-bit -> 8 sublanes, 16-bit -> 16, 8-bit -> 32
    return max(8, 8 * (4 // max(1, itemsize)))


def _round_up(v: int, m: int) -> int:
    return ((v + m - 1) // m) * m


def positional_encoding(x: jnp.ndarray,
                        pe_table: jnp.ndarray,
                        *,
                        dropout_p: float = 0.1,
                        train: bool = False,
                        seed: int = 0,
                        block_rows: int | None = None) -> jnp.ndarray:
    """Forward pass of PositionalEncoding.

    x        : (S, B, D) activations
    pe_table : (max_len, 1, D) buffer from build_pe_table (already in x.dtype)
    """
    S, B, D = x.shape
    max_len = pe_table.shape[0]
    if max_len < S:
        raise ValueError(f"max_len ({max_len}) < seq_len ({S})")
    if pe_table.dtype != x.dtype:
        # Prefer building the table in the activation dtype once (see
        # build_pe_table(dtype=...)); this fallback cast keeps correctness.
        pe_table = pe_table.astype(x.dtype)

    gen = _tpu_generation()
    itemsize = jnp.dtype(x.dtype).itemsize
    row_bytes = B * D * itemsize

    # --- generation-specific block sizing -----------------------------------
    if block_rows is None:
        if gen == 6:
            target_bytes = 8 * _MiB      # 1.3-1.4 TB/s: amortize 0.35us/step
        else:                            # v5e / v7x / unknown
            target_bytes = 4 * _MiB
        block_rows = max(1, target_bytes // max(1, row_bytes))
        if gen >= 7:
            # keep >= ~8 grid steps so the "parallel" axis feeds both v7x TCs
            block_rows = min(block_rows, max(1, pl.cdiv(S, 8)))
    block_rows = int(min(block_rows, S))
    grid_steps = pl.cdiv(S, block_rows)
    grid = (grid_steps,)

    # --- buffering depth (deeper input pipeline only pays off on v7x) -------
    in_depth = 3 if (gen >= 7 and grid_steps >= 3) else 2

    def _buffered_spec(shape, index_map, depth):
        if depth != 2:
            try:
                return pl.BlockSpec(shape, index_map,
                                    pipeline_mode=pl.Buffered(depth))
            except TypeError:            # older API: fall back to depth-2
                pass
        return pl.BlockSpec(shape, index_map)

    x_spec = _buffered_spec((block_rows, B, D), lambda i, s: (i, 0, 0), in_depth)
    pe_spec = pl.BlockSpec((block_rows, 1, D), lambda i, s: (i, 0, 0))
    out_spec = pl.BlockSpec((block_rows, B, D), lambda i, s: (i, 0, 0))

    # --- scoped VMEM limit from the (padding-aware) buffered working set ----
    pack = _sublane_pack(itemsize)
    pad_B = _round_up(B, pack)
    pad_D = _round_up(D, 128)
    x_blk_vmem = block_rows * pad_B * pad_D * itemsize
    pe_itemsize = jnp.dtype(pe_table.dtype).itemsize
    pe_blk_vmem = block_rows * _sublane_pack(pe_itemsize) * pad_D * pe_itemsize
    needed = in_depth * x_blk_vmem + 2 * x_blk_vmem + 2 * pe_blk_vmem
    vmem_cap = 48 * _MiB if gen >= 7 else 100 * _MiB   # v7x has 64 MiB/TC total
    vmem_limit = int(min(vmem_cap, max(32 * _MiB, 2 * needed)))

    seed_arr = jnp.asarray([seed], dtype=jnp.int32)
    kernel = functools.partial(_pe_kernel, p=float(dropout_p), train=bool(train))

    return pl.pallas_call(
        kernel,
        out_shape=jax.ShapeDtypeStruct(x.shape, x.dtype),
        grid_spec=pltpu.PrefetchScalarGridSpec(
            num_scalar_prefetch=1,               # seed scalar -> SMEM
            grid=grid,
            in_specs=[x_spec, pe_spec],          # full pe table; blocks pick rows
            out_specs=out_spec,
        ),
        compiler_params=pltpu.CompilerParams(
            dimension_semantics=("parallel",),
            vmem_limit_bytes=vmem_limit,
        ),
    )(seed_arr, x, pe_table)


# ----------------------------------------------------------------------------
# Demo / correctness check
# ----------------------------------------------------------------------------
if __name__ == "__main__":
    d_model = 128     # lane-dense last dim (multiple of 128)
    batch = 8         # full f32 sublane occupancy on the (B, D) minor dims
    seq_len = 32
    max_len = 128

    key = jax.random.PRNGKey(0)
    x = jax.random.normal(key, (seq_len, batch, d_model), dtype=jnp.float32)
    # Build + cast the pe buffer ONCE at init time (no per-call slice/cast).
    pe_table = build_pe_table(d_model, max_len, dtype=x.dtype)

    # Eval-mode forward with an explicit small tile -> 4 grid steps,
    # exercising the software pipeline.
    out = positional_encoding(x, pe_table, dropout_p=0.1, train=False,
                              block_rows=8)
    out = jax.block_until_ready(out)

    ref = x + pe_table[:seq_len].astype(x.dtype)
    assert out.shape == x.shape and out.dtype == x.dtype
    assert jnp.allclose(out, ref, atol=1e-6, rtol=1e-6)

    # Auto-tiled path (exercises the generation-specific block heuristic).
    out2 = jax.block_until_ready(
        positional_encoding(x, pe_table, dropout_p=0.1, train=False))
    assert jnp.allclose(out2, ref, atol=1e-6, rtol=1e-6)

    # Training-mode dropout uses the on-chip TPU PRNG (TPU backend only).
    # PyTorch's RNG stream cannot be reproduced; sanity-check mask/scale only.
    if jax.default_backend() == "tpu":
        out_tr = positional_encoding(x, pe_table, dropout_p=0.1, train=True,
                                     seed=123, block_rows=8)
        out_tr = jax.block_until_ready(out_tr)
        dropped = jnp.isclose(out_tr, 0.0)
        kept_ok = jnp.where(dropped, True,
                            jnp.isclose(out_tr, ref / 0.9, atol=1e-5))
        assert bool(jnp.all(kept_ok))

    print("KERNEL_OK")
</pallas_src>

<mosaic_0001>
module attributes {stable_mosaic.version = 11 : i64} {
  func.func @_pe_kernel(%arg0: i32, %arg1: memref<1xi32, #tpu.memory_space<smem>>, %arg2: memref<8x8x128xf32, #tpu.memory_space<vmem>>, %arg3: memref<8x1x128xf32, #tpu.memory_space<vmem>>, %arg4: memref<8x8x128xf32, #tpu.memory_space<vmem>>) attributes {dimension_semantics = [#tpu.dimension_semantics<parallel>], iteration_bounds = array<i64: 4>, scalar_prefetch = 1 : i64, scratch_operands = 0 : i64, tpu.core_type = #tpu.core_type<tc>, window_params = [{transform_indices = @transform_0, window_bounds = array<i64: 8, 8, 128>}, {transform_indices = @transform_1, window_bounds = array<i64: 8, 1, 128>}, {transform_indices = @transform_2, window_bounds = array<i64: 8, 8, 128>}]} {
    %c0 = arith.constant 0 : index
    %c0_0 = arith.constant 0 : index
    %c0_1 = arith.constant 0 : index
    %0 = vector.load %arg2[%c0, %c0_0, %c0_1] : memref<8x8x128xf32, #tpu.memory_space<vmem>>, vector<8x8x128xf32>
    %c0_2 = arith.constant 0 : index
    %c0_3 = arith.constant 0 : index
    %c0_4 = arith.constant 0 : index
    %1 = vector.load %arg3[%c0_2, %c0_3, %c0_4] : memref<8x1x128xf32, #tpu.memory_space<vmem>>, vector<8x1x128xf32>
    %2 = vector.broadcast %1 : vector<8x1x128xf32> to vector<8x8x128xf32>
    %3 = arith.addf %0, %2 : vector<8x8x128xf32>
    %c0_5 = arith.constant 0 : index
    %c0_6 = arith.constant 0 : index
    %c0_7 = arith.constant 0 : index
    %4 = vector.load %arg4[%c0_5, %c0_6, %c0_7] : memref<8x8x128xf32, #tpu.memory_space<vmem>>, vector<8x8x128xf32>
    tpu.vector_store %arg4[%c0_5, %c0_6, %c0_7], %3 {strides = array<i32>} : memref<8x8x128xf32, #tpu.memory_space<vmem>>, vector<8x8x128xf32>,
    return
  }
  func.func @transform_0(%arg0: i32, %arg1: memref<1xi32, #tpu.memory_space<smem>>) -> (i32, i32, i32) {
    %c0_i32 = arith.constant 0 : i32
    %c0_i32_0 = arith.constant 0 : i32
    %c0_i32_1 = arith.constant 0 : i32
    return %arg0, %c0_i32, %c0_i32_0 : i32, i32, i32
  }
  func.func @transform_1(%arg0: i32, %arg1: memref<1xi32, #tpu.memory_space<smem>>) -> (i32, i32, i32) {
    %c0_i32 = arith.constant 0 : i32
    %c0_i32_0 = arith.constant 0 : i32
    %c0_i32_1 = arith.constant 0 : i32
    return %arg0, %c0_i32, %c0_i32_0 : i32, i32, i32
  }
  func.func @transform_2(%arg0: i32, %arg1: memref<1xi32, #tpu.memory_space<smem>>) -> (i32, i32, i32) {
    %c0_i32 = arith.constant 0 : i32
    %c0_i32_0 = arith.constant 0 : i32
    %c0_i32_1 = arith.constant 0 : i32
    return %arg0, %c0_i32, %c0_i32_0 : i32, i32, i32
  }
}

</mosaic_0001>

<bundles_post_ra>
// kernel: tpu_custom_call.1
= control target key start
LH: loop header
LB: loop body
LE: loop exit
PB: predicated region body
PF: predicated region fallthrough
CT: control target
= control target key end

     0   :  { %9 = vsyncpa [#allocation5], 0  ;;  %s874_s0 = inlined_call_operand.<no memory space> [shape: s32[1], index: 0, kind: input, shape index: {}]   ;;  %s875_s1 = inlined_call_operand.hbm [shape: f32[32,8,128], index: 1, kind: input, shape index: {}]   ;;  %s876_s2 = inlined_call_operand.hbm [shape: f32[128,1,128], index: 2, kind: input, shape index: {}]   ;;  %s877_s3 = inlined_call_operand.hbm [shape: f32[32,8,128], index: 3, kind: output, shape index: {}]  }
   0x1   :  { %11 = vsyncpa [#allocation5 + $0x1], 0 }
   0x2   :  { %12 = vsyncpa [#allocation8], 0 }
   0x3   :  { %14 = vsyncpa [#allocation8 + $0x1], 0 }
   0x4   :  { %15 = vsyncpa [#allocation6], 0 }
   0x5   :  { %17 = vsyncpa [#allocation6 + $0x1], 0  ;;  %s644_s12 = smov 0   ;;  %s646_s13 = smov 0  }
   0x6   :  { %s648_s0 = smov 0   ;;  %s650_s14 = smov 0  }
   0x7 LB: > { %s665_s15 = sadd.s32 4294967295, %s613_s14   ;;  %s397_s16 = sadd.s32 4294967294, %s613_s14   ;;  %s613_s14 = sphi %s650_s14, %s892_s14   ;;  %s609_s0 = sphi %s648_s0, %s891_s0   ;;  %s605_s13 = sphi %s646_s13, %s890_s13   ;;  %s601_s12 = sphi %s644_s12, %s889_s12  }
   0x8   : > { %s669_s17 = sadd.s32 1, %s613_s14   ;;  %s30_s18 = sadd.s32 1, %s609_s0 }
   0x9   : > { %s27_s19 = ssub.s32 %s613_s14, %s669_s17  ;;  %p37_p0 = scmp.ne.s32.totalorder %s609_s0, %s605_s13 }
   0xa   : > { %p28_p1 = scmp.eq.s32.totalorder %s27_s19, 0  ;;  %p38_p2 = scmp.eq.s32.totalorder %s613_s14, 0 }
   0xb   : > { %p43_p3 = scmp.ne.s32.totalorder %s605_s13, %s601_s12  ;;  %p44_p4 = scmp.eq.s32.totalorder %s665_s15, 0 }
   0xc   : > { %s681_s20 = scalar_select %p28_p1, %s609_s0, %s30_s18  }
   0xd   : > { %p683_p5 = por %p38_p2, %p37_p0  ;;  %p687_p6 = por %p44_p4, %p43_p3 }
   0xe   : > { %p93_p7 = scmp.eq.s32.totalorder %s665_s15, 3  ;;  %p99_p8 = scmp.eq.s32.totalorder %s397_s16, 3 }
   0xf   : > { %s881_s22 = scalar_select %p687_p6, 1, 0 }
  0x10   : > { %p443_p9 = scmp.lt.s32.totalorder %s613_s14, 4  ;;  %p693_p10 = por %p93_p7, %p37_p0 }
  0x11   : > { %p697_p11 = por %p99_p8, %p43_p3  ;;  %s702_s25 = sand.u32 1, %s609_s0  }
  0x12   : > { %s882_s23 = scalar_select %p693_p10, 1, 0 }
  0x13   : > { %s883_s24 = scalar_select %p697_p11, 1, 0 }
  0x14   : > { %s423_s26 = sshll.u32 %s613_s14, 10  ;;  %s400_s27 = sshll.u32 %s702_s25, 6 }
  0x15   : > { %s709_s30 = scalar_lea.hbm %s875_s1, %s423_s26  ;;  %s123_s4 = scalar_lea.vmem [#allocation4], %s400_s27 }
  0x16   : > { %s130_s5 = sshll.u32 %s123_s4, 4  ;;  %p713_p12 = pnand %p443_p9, %p683_p5  ;;  %s717_s5 = int_to_ptr.vmem [resolvable:$true] %s130_s5 }
  0x17   : > { %s120_s7 = scalar_lea.sflag [#allocation5], %s702_s25  ;;  %s483_s8 = scalar_lea.hbm %s709_s30, 1024 }
  0x18   : > { %p484_p13 = scmp.ne.s32.totalorder %s709_s30, %s483_s8  ;;  %p485_p0 = pneg %p713_p12 }
  0x19   : > { %s488_s11 = scalar_lea.hbm %s875_s1, 4096  ;;  %p489_p3 = scmp.lt.u32.totalorder %s709_s30, %s875_s1 }
  0x1a   : > { %p486_p1 = pnand %p485_p0, %p484_p13  ;;  %p490_p4 = scmp.lt.u32.totalorder %s488_s11, %s483_s8 }
  0x1b   : > { %p492_p7 = scmp.lt.u32.totalorder %s483_s8, %s709_s30 }
  0x1c   : > { %p487_p2 = pneg %p486_p1  ;;  %p491_p5 = por %p490_p4, %p489_p3 }
  0x1e   : > { %p493_p8 = por %p492_p7, %p491_p5 }
  0x20   : > { %p494_p9 = pnand %p493_p8, %p487_p2 }
  0x22   : > { %497 = shalt.err (!%p494_p9)
}
  0x23   : > { %s498_s19 = scalar_lea.vmem %s717_s5, 1024  ;;  %s615_s21 = smov [#allocation4]  }
  0x24   : > { %p499_p13 = scmp.ne.s32.totalorder %s717_s5, %s498_s19  ;;  %s503_s26 = sshll.u32 %s615_s21, 4  ;;  %s504_s26 = int_to_ptr.vmem [resolvable:$false] %s503_s26 }
  0x25   : > { %s505_s27 = scalar_lea.vmem %s504_s26, 2048  ;;  %p506_p10 = scmp.lt.s32.totalorder %s717_s5, %s504_s26 }
  0x26   : > { %p501_p1 = pnand %p499_p13, %p485_p0  ;;  %p507_p3 = scmp.lt.s32.totalorder %s505_s27, %s498_s19 }
  0x28   : > { %p502_p11 = pneg %p501_p1  ;;  %p508_p4 = por %p507_p3, %p506_p10 }
  0x2a   : > { %p509_p5 = pnand %p508_p4, %p502_p11 }
  0x2c   : > { %512 = shalt.err (!%p509_p5)
}
  0x2d   : > { %s616_s28 = smov 128   ;;  %s617_s29 = smov 8  }
  0x2e   : > { %435 = dma.hbm_to_vmem [thread:$0]  (!%p713_p12), %s709_s30, 1024, %s717_s5, %s120_s7, %s616_s28, %s616_s28, %s617_s29  }
  0x2f   : > { %p406_p2 = scmp.ge.s32.totalorder %s613_s14, 1  ;;  %p159_p7 = scmp.lt.s32.totalorder %s613_s14, 5 }
  0x30   : > { %s403_s4 = sshll.u32 %s702_s25, 3  ;;  %s424_s9 = sshll.u32 %s613_s14, 7 }
  0x31   : > { %p750_p10 = pnand %p406_p2, %p159_p7  ;;  %s144_s10 = scalar_lea.vmem [#allocation7], %s403_s4 }
  0x32   : > { %s151_s11 = sshll.u32 %s144_s10, 4  ;;  %s758_s19 = scalar_lea.hbm %s876_s2, %s424_s9  ;;  %s760_s11 = int_to_ptr.vmem [resolvable:$true] %s151_s11 }
  0x33   : > { %s141_s30 = scalar_lea.sflag [#allocation8], %s702_s25  ;;  %s513_s5 = scalar_lea.hbm %s758_s19, 128 }
  0x34   : > { %p514_p11 = scmp.ne.s32.totalorder %s758_s19, %s513_s5  ;;  %s518_s26 = scalar_lea.hbm %s876_s2, 2048 }
  0x35   : > { %p519_p13 = scmp.lt.u32.totalorder %s758_s19, %s876_s2  ;;  %p520_p1 = scmp.lt.u32.totalorder %s518_s26, %s513_s5 }
  0x36   : > { %p516_p8 = pnand %p514_p11, %p485_p0  ;;  %p522_p4 = scmp.lt.u32.totalorder %s513_s5, %s758_s19 }
  0x37   : > { %p521_p3 = por %p520_p1, %p519_p13 }
  0x38   : > { %p517_p9 = pneg %p516_p8 }
  0x39   : > { %p523_p5 = por %p522_p4, %p521_p3 }
  0x3b   : > { %p524_p2 = pnand %p523_p5, %p517_p9 }
  0x3d   : > { %527 = shalt.err (!%p524_p2)
}
  0x3e   : > { %s528_s29 = scalar_lea.vmem %s760_s11, 128  ;;  %s618_s4 = smov [#allocation7]  }
  0x3f   : > { %p529_p7 = scmp.ne.s32.totalorder %s760_s11, %s528_s29  ;;  %s533_s9 = sshll.u32 %s618_s4, 4  ;;  %s534_s9 = int_to_ptr.vmem [resolvable:$false] %s533_s9 }
  0x40   : > { %s535_s10 = scalar_lea.vmem %s534_s9, 256  ;;  %p536_p6 = scmp.lt.s32.totalorder %s760_s11, %s534_s9 }
  0x41   : > { %p531_p11 = pnand %p529_p7, %p485_p0  ;;  %p537_p13 = scmp.lt.s32.totalorder %s535_s10, %s528_s29 }
  0x43   : > { %p532_p8 = pneg %p531_p11  ;;  %p538_p1 = por %p537_p13, %p536_p6 }
  0x45   : > { %p539_p3 = pnand %p538_p1, %p532_p8 }
  0x47   : > { %542 = shalt.err (!%p539_p3)
}
  0x48   : > { %s619_s16 = smov 16   ;;  %s620_s18 = smov 1  }
  0x49   : > { %438 = dma.hbm_to_vmem [thread:$0]  (!%p713_p12), %s758_s19, 128, %s760_s11, %s141_s30, %s619_s16, %s619_s16, %s620_s18  }
  0x4a   : > { %163 = sbr.rel (%p750_p10) target bundleno = 112 (0x70), region = 28  ;;  %s791_s5 = sand.u32 (!%p750_p10), 1, %s605_s13  }
  0x4b   : > { %s407_s7 = sshll.u32 (!%p750_p10), %s791_s5, 6  ;;  %s166_s21 = scalar_lea.sflag (!%p750_p10), [#allocation5], %s791_s5 }
  0x4c   : > { %s795_s26 = scalar_lea.vmem (!%p750_p10), [#allocation4], %s407_s7  ;;  %p886_p6 = scmp.ne.s32.totalorder (!%p750_p10), %s881_s22, 0 }
  0x51   : > { %588 = dma.done.wait (%p886_p6), %s166_s21, 1024  }
  0x52   : > { %590 = vsyncadd (%p886_p6), %s166_s21, 4294966272  ;;  %s408_s25 = sshll.u32 %s791_s5, 3  ;;  %s175_s6 = scalar_lea.sflag [#allocation8], %s791_s5 }
  0x53   : > { %s803_s8 = scalar_lea.vmem [#allocation7], %s408_s25 }
  0x54   : > { %592 = dma.done.wait (%p886_p6), %s175_s6, 128  }
  0x55   : > { %594 = vsyncadd (%p886_p6), %s175_s6, 4294967168  ;;  %v207_v0 = vld [vmem:[%s795_s26] sm:$0xff]  ;;  %v208_v2 = vld [vmem:[%s795_s26 + $0x8] sm:$0xff]  ;;  %s203_s22 = scalar_lea.vmem [#allocation9], %s407_s7  ;;  %s425_s19 = sshll.u32 %s665_s15, 10 }
  0x56   : > { %v410_v1 = vld [vmem:[%s803_s8] ss:$0 sm:$0xff]  ;;  %v411_v4 = vld [vmem:[%s803_s8 + $0x1] ss:$0 sm:$0xff]  ;;  %v209_v5 = vld [vmem:[%s795_s26 + $0x10] sm:$0xff]  ;;  %s301_s11 = sshll.u32 %s203_s22, 4  ;;  %s831_s27 = scalar_lea.hbm %s877_s3, %s425_s19  ;;  %s825_s11 = int_to_ptr.vmem [resolvable:$true] %s301_s11 }
  0x57   : > { %v271_v3 = vadd.f32 %v410_v1, %v207_v0  ;;  %v412_v6 = vld [vmem:[%s803_s8 + $0x2] ss:$0 sm:$0xff]  ;;  %v272_v7 = vadd.f32 %v411_v4, %v208_v2  ;;  %v210_v9 = vld [vmem:[%s795_s26 + $0x18] sm:$0xff]  ;;  %v413_v10 = vld [vmem:[%s803_s8 + $0x3] ss:$0 sm:$0xff]  ;;  %s288_s28 = scalar_lea.sflag [#allocation6], %s791_s5 }
  0x58   : > { %v273_v8 = vadd.f32 %v412_v6, %v209_v5  ;;  %v211_v11 = vld [vmem:[%s795_s26 + $0x20] sm:$0xff]  ;;  %v274_v12 = vadd.f32 %v413_v10, %v210_v9  ;;  %v212_v14 = vld [vmem:[%s795_s26 + $0x28] sm:$0xff]  ;;  %v213_v18 = vld [vmem:[%s795_s26 + $0x30] sm:$0xff]  ;;  %s543_s29 = scalar_lea.vmem %s825_s11, 1024  ;;  %p887_p0 = scmp.ne.s32.totalorder %s882_s23, 0 }
  0x59   : > { %279 = vst [vmem:[%s203_s22] sm:$0xff] %v271_v3  ;;  %v414_v13 = vld [vmem:[%s803_s8 + $0x4] ss:$0 sm:$0xff]  ;;  %v415_v15 = vld [vmem:[%s803_s8 + $0x5] ss:$0 sm:$0xff]  ;;  %280 = vst [vmem:[%s203_s22 + $0x8] sm:$0xff] %v272_v7  ;;  %p544_p12 = scmp.ne.s32.totalorder %s825_s11, %s543_s29  ;;  %s621_s4 = smov [#allocation9]  }
  0x5a   : > { %281 = vst [vmem:[%s203_s22 + $0x10] sm:$0xff] %v273_v8  ;;  %v275_v16 = vadd.f32 %v414_v13, %v211_v11  ;;  %v276_v17 = vadd.f32 %v415_v15, %v212_v14  ;;  %v416_v19 = vld [vmem:[%s803_s8 + $0x6] ss:$0 sm:$0xff]  ;;  %v214_v20 = vld [vmem:[%s795_s26 + $0x38] sm:$0xff]  ;;  %282 = vst [vmem:[%s203_s22 + $0x18] sm:$0xff] %v274_v12  ;;  %s547_s9 = sshll.u32 %s621_s4, 4  ;;  %s548_s9 = int_to_ptr.vmem [resolvable:$false] %s547_s9 }
  0x5b   : > { %v277_v21 = vadd.f32 %v416_v19, %v213_v18  ;;  %v417_v22 = vld [vmem:[%s803_s8 + $0x7] ss:$0 sm:$0xff]  ;;  %p545_p10 = pnand %p544_p12, %p887_p0  ;;  %s549_s10 = scalar_lea.vmem %s548_s9, 2048 }
  0x5c   : > { %283 = vst [vmem:[%s203_s22 + $0x20] sm:$0xff] %v275_v16  ;;  %284 = vst [vmem:[%s203_s22 + $0x28] sm:$0xff] %v276_v17  ;;  %v278_v23 = vadd.f32 %v417_v22, %v214_v20  ;;  %p550_p4 = scmp.lt.s32.totalorder %s825_s11, %s548_s9  ;;  %p551_p5 = scmp.lt.s32.totalorder %s549_s10, %s543_s29 }
  0x5d   : > { %285 = vst [vmem:[%s203_s22 + $0x30] sm:$0xff] %v277_v21  ;;  %p546_p9 = pneg %p545_p10 }
  0x5e   : > { %286 = vst [vmem:[%s203_s22 + $0x38] sm:$0xff] %v278_v23  ;;  %p552_p2 = por %p551_p5, %p550_p4 }
  0x60   : > { %p553_p7 = pnand %p552_p2, %p546_p9 }
  0x62   : > { %556 = shalt.err (!%p553_p7)
}
  0x63   : > { %s557_s16 = scalar_lea.hbm %s831_s27, 1024  ;;  %s561_s21 = scalar_lea.hbm %s877_s3, 4096 }
  0x64   : > { %p558_p11 = scmp.ne.s32.totalorder %s831_s27, %s557_s16  ;;  %p562_p1 = scmp.lt.u32.totalorder %s831_s27, %s877_s3 }
  0x65   : > { %p563_p3 = scmp.lt.u32.totalorder %s561_s21, %s557_s16  ;;  %p565_p12 = scmp.lt.u32.totalorder %s557_s16, %s831_s27 }
  0x66   : > { %p559_p8 = pnand %p558_p11, %p887_p0 }
  0x67   : > { %p564_p6 = por %p563_p3, %p562_p1 }
  0x68   : > { %p560_p13 = pneg %p559_p8 }
  0x69   : > { %p566_p10 = por %p565_p12, %p564_p6 }
  0x6b   : > { %p567_p9 = pnand %p566_p10, %p560_p13 }
  0x6d   : > { %570 = shalt.err (!%p567_p9)
}
  0x6e   : > { %s622_s6 = smov 128   ;;  %s623_s8 = smov 8  }
  0x6f   : > { %430 = dma.vmem_to_hbm [thread:$0]  (%p887_p0), %s825_s11, 1024, %s831_s27, %s288_s28, %s622_s6, %s622_s6, %s623_s8  }
  0x70 PF: > { %p444_p4 = scmp.ge.s32.totalorder %s613_s14, 2  ;;  %s316_s22 = sand.u32 1, %s601_s12  }
  0x71   : > { %p888_p5 = scmp.ne.s32.totalorder %s883_s24, 0  ;;  %s317_s19 = scalar_lea.sflag [#allocation6], %s316_s22 }
  0x73   : > { %p440_p2 = pnand %p444_p4, %p888_p5 }
  0x75   : > { %596 = dma.done.wait (!%p440_p2), %s317_s19, 1024  }
  0x76   : > { %598 = vsyncadd (!%p440_p2), %s317_s19, 4294966272  ;;  %p20_p7 = scmp.ge.s32.totalorder %s669_s17, 6   ;;  %s889_s12 = smov %s605_s13 }
  0x77   : > { %s890_s13 = smov %s609_s0  ;;  %s891_s0 = smov %s681_s20 }
  0x78   : > { %s892_s14 = smov %s669_s17  ;;  %22 = sbr.rel (!%p20_p7) target bundleno = 7 (0x7), region = 86 }
  0x7f   :  { %322 = vsyncpa [#allocation5], 1 }
  0x80   :  { %324 = vsyncpa [#allocation5 + $0x1], 1 }
  0x81   :  { %325 = vsyncpa [#allocation8], 1 }
  0x82   :  { %327 = vsyncpa [#allocation8 + $0x1], 1 }
  0x83   :  { %328 = vsyncpa [#allocation6], 1 }
  0x84   :  { %330 = vsyncpa [#allocation6 + $0x1], 1 }

</bundles_post_ra>
